<compile_context>
chip_gen: v5e
topology: v5e:2x2
jax: 0.10.0
libtpu: 0.0.40
codegen_flags: <defaults>
</compile_context>

<pallas_src>
import jax
import jax.numpy as jnp
from jax.experimental import pallas as pl
from jax.experimental.pallas import tpu as pltpu  # noqa: F401  (TPU backend)

P_DROP = 0.1
_KEEP_SCALE = 1.0 / (1.0 - P_DROP)


def fused_attention_kernel(m1_ref, m2t_ref, m3_ref, rnd_ref, o_ref):
    """Single fused kernel.

    Stage 1: qk = (0.125*m1) @ m2^T (L-batched, contract K), softmax(-1),
             dropout(p=0.1)                                   -> x  (L, N, E)
    Stage 2: q = k = x @ m3^T, v = x; per-batch single-head attention,
             computed batched over N                           -> o  (N, L, E)
    """
    m1 = m1_ref[...] * 0.125            # (L, N, K)  fold 0.125 into the smallest tensor
    m2t = m2t_ref[...]                  # (L, K, E)  pre-transposed, E lane-dense
    w = m3_ref[...]                     # (E, E)
    u = rnd_ref[...]                    # (L, N, E)  uniform[0,1) dropout randoms
    E = w.shape[0]

    # ---- stage 1: scaled QK^T (batched over L, contract K) ----------------
    qk = jnp.einsum("lnk,lke->lne", m1, m2t,
                    preferred_element_type=jnp.float32)        # (L, N, E)

    # softmax over last dim; stay in 3-D (no (L*N,E) reshape -> no relayout)
    z = qk - jnp.max(qk, axis=-1, keepdims=True)
    ez = jnp.exp(z)
    p = ez / jnp.sum(ez, axis=-1, keepdims=True)

    # ---- dropout(p=0.1), training mode: zero w.p. 0.1, scale by 1/0.9 -----
    x = jnp.where(u >= P_DROP, p * _KEEP_SCALE, 0.0)           # (L, N, E) == dropout_qk

    # ---- stage 2: single-head self-attention, batched over N --------------
    xn = jnp.swapaxes(x, 0, 1)                                  # (N, L, E): one relayout
    qn = jnp.einsum("nle,fe->nlf", xn, w,
                    preferred_element_type=jnp.float32)         # (N, L, E)  q == k
    s = jnp.einsum("nle,nme->nlm", qn, qn,
                   preferred_element_type=jnp.float32) * (1.0 / float(E) ** 0.5)
    s = s - jnp.max(s, axis=-1, keepdims=True)
    es = jnp.exp(s)
    pa = es / jnp.sum(es, axis=-1, keepdims=True)               # (N, L, L)
    # single unmasked, lane-dense whole-ref store
    o_ref[...] = jnp.einsum("nlm,nme->nle", pa, xn,
                            preferred_element_type=jnp.float32)  # (N, L, E)


def model_forward(m1, m2, m3, dropout_key):
    L, N, _ = m1.shape
    E = m2.shape[1]
    # one-off XLA transpose (128 KiB) so the kernel never re-lays m2 out
    m2t = jnp.swapaxes(m2, -2, -1)                              # (L, K, E)
    # dropout randoms generated outside the kernel (portable: works on TPU
    # and in interpret mode; the TPU hardware PRNG has no interpret lowering)
    u = jax.random.uniform(dropout_key, (L, N, E), dtype=jnp.float32)
    out_nle = pl.pallas_call(
        fused_attention_kernel,
        out_shape=jax.ShapeDtypeStruct((N, L, E), jnp.float32),
    )(m1, m2t, m3, u)
    # kernel emits (N, L, E); back to torch's (L, N, E) then unsqueeze(0)
    return jnp.transpose(out_nle, (1, 0, 2))[None]              # (1, L, N, E)


model_forward_jit = jax.jit(model_forward)


if __name__ == "__main__":
    key = jax.random.PRNGKey(0)
    k1, k2, k3, k4 = jax.random.split(key, 4)

    # small shapes: L=8 (seq), N=4 (batch), E=128 (embed), K=32 (inner dim)
    L, N, E, K = 8, 4, 128, 32
    m1 = jax.random.normal(k1, (L, N, K), dtype=jnp.float32)
    m2 = jax.random.normal(k2, (L, E, K), dtype=jnp.float32)
    m3 = jax.random.normal(k3, (E, E), dtype=jnp.float32) * (1.0 / (E ** 0.5))

    out = model_forward_jit(m1, m2, m3, k4)
    out = jax.block_until_ready(out)
    assert out.shape == (1, L, N, E), out.shape
    assert out.dtype == jnp.float32
    assert bool(jnp.all(jnp.isfinite(out)))
    print("KERNEL_OK")
</pallas_src>

<mosaic_0001>
module attributes {stable_mosaic.version = 11 : i64} {
  func.func @fused_attention_kernel(%arg0: memref<8x4x32xf32, #tpu.memory_space<vmem>>, %arg1: memref<8x32x128xf32, #tpu.memory_space<vmem>>, %arg2: memref<128x128xf32, #tpu.memory_space<vmem>>, %arg3: memref<8x4x128xf32, #tpu.memory_space<vmem>>, %arg4: memref<4x8x128xf32, #tpu.memory_space<vmem>>) attributes {dimension_semantics = [], scalar_prefetch = 0 : i64, scratch_operands = 0 : i64, tpu.core_type = #tpu.core_type<tc>} {
    %c0 = arith.constant 0 : index
    %c0_0 = arith.constant 0 : index
    %c0_1 = arith.constant 0 : index
    %0 = vector.load %arg0[%c0, %c0_0, %c0_1] : memref<8x4x32xf32, #tpu.memory_space<vmem>>, vector<8x4x32xf32>
    %cst = arith.constant 1.250000e-01 : f32
    %1 = vector.broadcast %cst : f32 to vector<8x4x32xf32>
    %2 = arith.mulf %0, %1 : vector<8x4x32xf32>
    %c0_2 = arith.constant 0 : index
    %c0_3 = arith.constant 0 : index
    %c0_4 = arith.constant 0 : index
    %3 = vector.load %arg1[%c0_2, %c0_3, %c0_4] : memref<8x32x128xf32, #tpu.memory_space<vmem>>, vector<8x32x128xf32>
    %c0_5 = arith.constant 0 : index
    %c0_6 = arith.constant 0 : index
    %4 = vector.load %arg2[%c0_5, %c0_6] : memref<128x128xf32, #tpu.memory_space<vmem>>, vector<128x128xf32>
    %c0_7 = arith.constant 0 : index
    %c0_8 = arith.constant 0 : index
    %c0_9 = arith.constant 0 : index
    %5 = vector.load %arg3[%c0_7, %c0_8, %c0_9] : memref<8x4x128xf32, #tpu.memory_space<vmem>>, vector<8x4x128xf32>
    "tpu.trace_start"() <{level = 10 : i32, message = "lnk,lke->lne"}> : () -> ()
    %cst_10 = arith.constant dense<0.000000e+00> : vector<8x4x128xf32>
    %6 = tpu.matmul %2, %3, %cst_10 {dimension_numbers = #tpu.dot_dimension_numbers<[2], [1], [1], [2], [0, 0, 0, 1, 1, 2], [0], [0]>} : vector<8x4x32xf32>, vector<8x32x128xf32>, vector<8x4x128xf32> -> vector<8x4x128xf32>
    "tpu.trace_stop"() : () -> ()
    %cst_11 = arith.constant dense<0xFF800000> : vector<8x4xf32>
    %7 = vector.multi_reduction <maximumf>, %6, %cst_11 [2] : vector<8x4x128xf32> to vector<8x4xf32>
    %8 = vector.shape_cast %7 : vector<8x4xf32> to vector<8x4x1xf32>
    %9 = vector.broadcast %8 : vector<8x4x1xf32> to vector<8x4x128xf32>
    %10 = arith.subf %6, %9 : vector<8x4x128xf32>
    %11 = math.exp %10 : vector<8x4x128xf32>
    %cst_12 = arith.constant dense<0.000000e+00> : vector<8x4xf32>
    %12 = vector.multi_reduction <add>, %11, %cst_12 [2] : vector<8x4x128xf32> to vector<8x4xf32>
    %13 = vector.shape_cast %12 : vector<8x4xf32> to vector<8x4x1xf32>
    %14 = vector.broadcast %13 : vector<8x4x1xf32> to vector<8x4x128xf32>
    %15 = arith.divf %11, %14 : vector<8x4x128xf32>
    %cst_13 = arith.constant 1.000000e-01 : f32
    %16 = vector.broadcast %cst_13 : f32 to vector<8x4x128xf32>
    %17 = arith.cmpf oge, %5, %16 : vector<8x4x128xf32>
    %cst_14 = arith.constant 1.11111116 : f32
    %18 = vector.broadcast %cst_14 : f32 to vector<8x4x128xf32>
    %19 = arith.mulf %15, %18 : vector<8x4x128xf32>
    %cst_15 = arith.constant 0.000000e+00 : f32
    %20 = vector.broadcast %cst_15 : f32 to vector<8x4x128xf32>
    %21 = arith.select %17, %19, %20 : vector<8x4x128xi1>, vector<8x4x128xf32>
    %22 = tpu.transpose %21, [1, 0, 2] : vector<8x4x128xf32> -> vector<4x8x128xf32>
    "tpu.trace_start"() <{level = 10 : i32, message = "nle,fe->nlf"}> : () -> ()
    %cst_16 = arith.constant dense<0.000000e+00> : vector<4x8x128xf32>
    %23 = tpu.matmul %22, %4, %cst_16 {dimension_numbers = #tpu.dot_dimension_numbers<[2], [1], [0, 1], [0], [0, 0, 0, 1, 1, 0], [], []>} : vector<4x8x128xf32>, vector<128x128xf32>, vector<4x8x128xf32> -> vector<4x8x128xf32>
    "tpu.trace_stop"() : () -> ()
    "tpu.trace_start"() <{level = 10 : i32, message = "nle,nme->nlm"}> : () -> ()
    %cst_17 = arith.constant dense<0.000000e+00> : vector<4x8x8xf32>
    %24 = tpu.matmul %23, %23, %cst_17 {dimension_numbers = #tpu.dot_dimension_numbers<[2], [2], [1], [1], [0, 0, 0, 1, 1, 1], [0], [0]>} : vector<4x8x128xf32>, vector<4x8x128xf32>, vector<4x8x8xf32> -> vector<4x8x8xf32>
    "tpu.trace_stop"() : () -> ()
    %cst_18 = arith.constant 0.0883883461 : f32
    %25 = vector.broadcast %cst_18 : f32 to vector<4x8x8xf32>
    %26 = arith.mulf %24, %25 : vector<4x8x8xf32>
    %cst_19 = arith.constant dense<0xFF800000> : vector<4x8xf32>
    %27 = vector.multi_reduction <maximumf>, %26, %cst_19 [2] : vector<4x8x8xf32> to vector<4x8xf32>
    %28 = vector.shape_cast %27 : vector<4x8xf32> to vector<4x8x1xf32>
    %29 = vector.broadcast %28 : vector<4x8x1xf32> to vector<4x8x8xf32>
    %30 = arith.subf %26, %29 : vector<4x8x8xf32>
    %31 = math.exp %30 : vector<4x8x8xf32>
    %cst_20 = arith.constant dense<0.000000e+00> : vector<4x8xf32>
    %32 = vector.multi_reduction <add>, %31, %cst_20 [2] : vector<4x8x8xf32> to vector<4x8xf32>
    %33 = vector.shape_cast %32 : vector<4x8xf32> to vector<4x8x1xf32>
    %34 = vector.broadcast %33 : vector<4x8x1xf32> to vector<4x8x8xf32>
    %35 = arith.divf %31, %34 : vector<4x8x8xf32>
    "tpu.trace_start"() <{level = 10 : i32, message = "nlm,nme->nle"}> : () -> ()
    %cst_21 = arith.constant dense<0.000000e+00> : vector<4x8x128xf32>
    %36 = tpu.matmul %35, %22, %cst_21 {dimension_numbers = #tpu.dot_dimension_numbers<[2], [1], [1], [2], [0, 0, 0, 1, 1, 2], [0], [0]>} : vector<4x8x8xf32>, vector<4x8x128xf32>, vector<4x8x128xf32> -> vector<4x8x128xf32>
    "tpu.trace_stop"() : () -> ()
    %c0_22 = arith.constant 0 : index
    %c0_23 = arith.constant 0 : index
    %c0_24 = arith.constant 0 : index
    %37 = vector.load %arg4[%c0_22, %c0_23, %c0_24] : memref<4x8x128xf32, #tpu.memory_space<vmem>>, vector<4x8x128xf32>
    tpu.vector_store %arg4[%c0_22, %c0_23, %c0_24], %36 {strides = array<i32>} : memref<4x8x128xf32, #tpu.memory_space<vmem>>, vector<4x8x128xf32>,
    return
  }
}

</mosaic_0001>

<bundles_post_ra>
// kernel: model_forward.1
= control target key start
LH: loop header
LB: loop body
LE: loop exit
PB: predicated region body
PF: predicated region fallthrough
CT: control target
= control target key end

     0   :  { %9 = vsyncpa [#allocation3], 0  ;;  %s1348_s0 = inlined_call_operand.vmem [shape: f32[8,4,32], index: 0, kind: input, shape index: {}]   ;;  %s1349_s1 = inlined_call_operand.hbm [shape: f32[8,32,128], index: 1, kind: input, shape index: {}]   ;;  %s1350_s2 = inlined_call_operand.hbm [shape: f32[128,128], index: 2, kind: input, shape index: {}]   ;;  %s1351_s3 = inlined_call_operand.vmem [shape: f32[8,4,128], index: 3, kind: input, shape index: {}]   ;;  %s1352_s4 = inlined_call_operand.vmem [shape: f32[4,8,128], index: 4, kind: output, shape index: {}]  }
   0x1   :  { %s17_s17 = sshll.u32 %s1349_s1, 4  ;;  %s18_s17 = int_to_ptr.hbm [resolvable:$true] %s17_s17 }
   0x2   :  { %10 = vsyncpa [#allocation5], 0  ;;  %s1010_s18 = smov [#allocation2]   ;;  %s30_s22 = sshll.u32 %s1350_s2, 4  ;;  %s31_s22 = int_to_ptr.hbm [resolvable:$true] %s30_s22 }
   0x3   :  { %s19_s19 = sshll.u32 %s1010_s18, 4  ;;  %s1011_s23 = smov 128   ;;  %s20_s19 = int_to_ptr.vmem [resolvable:$true] %s19_s19 }
   0x4   :  { %s1012_s24 = smov 8   ;;  %s1013_s25 = smov [#allocation4]  }
   0x5   :  { %25 = dma.hbm_to_vmem [thread:$0]  %s18_s17, 4096, %s20_s19, [#allocation3], %s1011_s23, %s1011_s23, %s1012_s24  }
   0x6   :  { %s32_s26 = sshll.u32 %s1013_s25, 4  ;;  %s33_s26 = int_to_ptr.vmem [resolvable:$true] %s32_s26 }
   0x7   :  { %38 = dma.hbm_to_vmem [thread:$0]  %s31_s22, 2048, %s33_s26, [#allocation5], %s1011_s23, %s1011_s23, %s1012_s24  }
   0x8   :  { %1006 = dma.done.wait [#allocation3], 4096  }
   0x9   :  { %1007 = vsyncadd [#allocation3], 4294963200 }
   0xa   :  { %1008 = dma.done.wait [#allocation5], 2048  }
   0xb   :  { %1009 = vsyncadd [#allocation5], 4294965248  ;;  %v68_v0 = vld [vmem:[#allocation2 + $0x18] sm:$0xff]  ;;  %v67_v3 = vld [vmem:[#allocation2 + $0x10] sm:$0xff]  ;;  %vm121_vm0 = vcmask 261120   ;;  %vm306_vm1 = vcmask 1043456  }
   0xc   :  { %v72_v1 = vld [vmem:[#allocation2 + $0x38] sm:$0xff]  ;;  %137 = vmatpush.msra.mxu3 %v68_v0  ;;  %v71_v4 = vld [vmem:[#allocation2 + $0x30] sm:$0xff]  ;;  %v66_v6 = vld [vmem:[#allocation2 + $0x8] sm:$0xff] }
   0xd   :  { %v76_v2 = vld [vmem:[#allocation2 + $0x58] sm:$0xff]  ;;  %160 = vmatpush.msra.mxu1 %v72_v1  ;;  %v75_v5 = vld [vmem:[#allocation2 + $0x50] sm:$0xff]  ;;  %v70_v7 = vld [vmem:[#allocation2 + $0x28] sm:$0xff] }
   0xe   :  { %183 = vmatpush.msra.mxu2 %v76_v2  ;;  %138 = vmatpush.msra.mxu3 %v67_v3  ;;  %v74_v8 = vld [vmem:[#allocation2 + $0x48] sm:$0xff]  ;;  %v65_v9 = vld [vmem:[#allocation2] sm:$0xff]  ;;  %v80_v18 = vld [vmem:[#allocation2 + $0x78] sm:$0xff] }
   0xf   :  { %161 = vmatpush.msra.mxu1 %v71_v4  ;;  %v69_v10 = vld [vmem:[#allocation2 + $0x20] sm:$0xff]  ;;  %v51_v13 = vld [vmem:[%s1348_s0 + $0x8] sm:$0xf]  ;;  %v92_v19 = vld [vmem:[#allocation2 + $0xd8] sm:$0xff] }
  0x10   :  { %184 = vmatpush.msra.mxu2 %v75_v5  ;;  %v49_v11 = vld [vmem:[%s1348_s0] sm:$0xf]  ;;  %v50_v12 = vld [vmem:[%s1348_s0 + $0x4] sm:$0xf]  ;;  %139 = vmatpush.msra.mxu3 %v66_v6  ;;  %v59_v17 = vmul.f32 0.125, %v51_v13  ;;  %v84_v20 = vld [vmem:[#allocation2 + $0x98] sm:$0xff] }
  0x11   :  { %162 = vmatpush.msra.mxu1 %v70_v7  ;;  %v73_v14 = vld [vmem:[#allocation2 + $0x40] sm:$0xff]  ;;  %v57_v15 = vmul.f32 0.125, %v49_v11  ;;  %v58_v16 = vmul.f32 0.125, %v50_v12  ;;  %v79_v21 = vld [vmem:[#allocation2 + $0x70] sm:$0xff]  ;;  %v52_v23 = vld [vmem:[%s1348_s0 + $0xc] sm:$0xf] }
  0x12   :  { %185 = vmatpush.msra.mxu2 %v74_v8  ;;  %140 = vmatpush.msra.mxu3 %v65_v9  ;;  %v91_v22 = vld [vmem:[#allocation2 + $0xd0] sm:$0xff]  ;;  %v55_v24 = vld [vmem:[%s1348_s0 + $0x18] sm:$0xf]  ;;  %v78_v26 = vld [vmem:[#allocation2 + $0x68] sm:$0xff]  ;;  %v60_v32 = vmul.f32 0.125, %v52_v23 }
  0x13   :  { %163 = vmatpush.msra.mxu1 %v69_v10  ;;  %892 = vmatmul.msk.f32.vlgmr.msra.gmra.mxu3 %vm121_vm0, %v57_v15  ;;  %v83_v25 = vld [vmem:[#allocation2 + $0x90] sm:$0xff]  ;;  %v90_v27 = vld [vmem:[#allocation2 + $0xc8] sm:$0xff]  ;;  %v77_v30 = vld [vmem:[#allocation2 + $0x60] sm:$0xff]  ;;  %v63_v33 = vmul.f32 0.125, %v55_v24 }
  0x14   :  { %186 = vmatpush.msra.mxu2 %v73_v14  ;;  %893 = vmatmul.msk.f32.vlgmr.msra.gmra.mxu1 %vm121_vm0, %v58_v16  ;;  %v82_v28 = vld [vmem:[#allocation2 + $0x88] sm:$0xff]  ;;  %v53_v29 = vld [vmem:[%s1348_s0 + $0x10] sm:$0xf]  ;;  %v89_v31 = vld [vmem:[#allocation2 + $0xc0] sm:$0xff] }
  0x15   :  { %894 = vmatmul.msk.f32.vlgmr.msra.gmra.mxu2 %vm121_vm0, %v59_v17  ;;  %206 = vmatpush.msrb.mxu3 %v80_v18  ;;  %v96_v34 = vld [vmem:[#allocation2 + $0xf8] sm:$0xff]  ;;  %v81_v35 = vld [vmem:[#allocation2 + $0x80] sm:$0xff]  ;;  %v61_v36 = vmul.f32 0.125, %v53_v29  ;;  %v95_v37 = vld [vmem:[#allocation2 + $0xf0] sm:$0xff] }
  0x16   :  { %275 = vmatpush.msrb.mxu2 %v92_v19  ;;  %229 = vmatpush.msrb.mxu1 %v84_v20  ;;  %v88_v38 = vld [vmem:[#allocation2 + $0xb8] sm:$0xff]  ;;  %v94_v40 = vld [vmem:[#allocation2 + $0xe8] sm:$0xff]  ;;  %v87_v41 = vld [vmem:[#allocation2 + $0xb0] sm:$0xff] }
  0x17   :  { %207 = vmatpush.msrb.mxu3 %v79_v21  ;;  %v56_v39 = vld [vmem:[%s1348_s0 + $0x1c] sm:$0xf]  ;;  %v54_v42 = vld [vmem:[%s1348_s0 + $0x14] sm:$0xf]  ;;  %v93_v43 = vld [vmem:[#allocation2 + $0xe0] sm:$0xff] }
  0x18   :  { %276 = vmatpush.msrb.mxu2 %v91_v22  ;;  %230 = vmatpush.msrb.mxu1 %v83_v25  ;;  %v64_v44 = vmul.f32 0.125, %v56_v39  ;;  %v86_v45 = vld [vmem:[#allocation2 + $0xa8] sm:$0xff]  ;;  %v85_v46 = vld [vmem:[#allocation2 + $0xa0] sm:$0xff]  ;;  %v62_v47 = vmul.f32 0.125, %v54_v42  ;;  %v112_v5 = vld [vmem:[#allocation4 + $0x78] sm:$0xff] }
  0x19   :  { %208 = vmatpush.msrb.mxu3 %v78_v26  ;;  %580 = vmatpush.xpose.msra.mxu0 %v112_v5  ;;  %v110_v42 = vld [vmem:[#allocation4 + $0x68] sm:$0xff] }
  0x1a   :  { %277 = vmatpush.msrb.mxu2 %v90_v27  ;;  %231 = vmatpush.msrb.mxu1 %v82_v28 }
  0x1b   :  { %209 = vmatpush.msrb.mxu3 %v77_v30 }
  0x1c   :  { %278 = vmatpush.msrb.mxu2 %v89_v31  ;;  %895 = vmatmul.msk.f32.vlgmr.msrb.gmra.mxu3 %vm121_vm0, %v60_v32 }
  0x1d   :  { %898 = vmatmul.msk.f32.vlgmr.msrb.gmra.mxu2 %vm121_vm0, %v63_v33  ;;  %298 = vmatpush.msra.mxu3 %v96_v34 }
  0x1e   :  { %232 = vmatpush.msrb.mxu1 %v81_v35 }
  0x1f   :  { %896 = vmatmul.msk.f32.vlgmr.msrb.gmra.mxu1 %vm121_vm0, %v61_v36  ;;  %299 = vmatpush.msra.mxu3 %v95_v37 }
  0x20   :  { %252 = vmatpush.msra.mxu1 %v88_v38 }
  0x21   :  { %300 = vmatpush.msra.mxu3 %v94_v40 }
  0x22   :  { %253 = vmatpush.msra.mxu1 %v87_v41  ;;  %v111_v41 = vld [vmem:[#allocation4 + $0x70] sm:$0xff] }
  0x23   :  { %301 = vmatpush.msra.mxu3 %v93_v43  ;;  %581 = vmatpush.xpose.msra.mxu0 %v111_v41  ;;  %v109_v43 = vld [vmem:[#allocation4 + $0x60] sm:$0xff] }
  0x24   :  { %254 = vmatpush.msra.mxu1 %v86_v45  ;;  %899 = vmatmul.msk.f32.vlgmr.msra.gmra.mxu3 %vm121_vm0, %v64_v44  ;;  %v108_v44 = vld [vmem:[#allocation4 + $0x58] sm:$0xff]  ;;  %v107_v45 = vld [vmem:[#allocation4 + $0x50] sm:$0xff] }
  0x26   :  { %255 = vmatpush.msra.mxu1 %v85_v46  ;;  %v106_v46 = vld [vmem:[#allocation4 + $0x48] sm:$0xff] }
  0x27   :  { %897 = vmatmul.msk.f32.vlgmr.msra.gmra.mxu1 %vm121_vm0, %v62_v47  ;;  %582 = vmatpush.xpose.msra.mxu0 %v110_v42  ;;  %v105_v47 = vld [vmem:[#allocation4 + $0x40] sm:$0xff]  ;;  %v1175_v42 = vld [vmem:[%s1351_s3 + $0x1c] sm:$0xf] }
  0x28   :  { %vm506_vm0 = vcmp.ge.f32.partialorder %v1175_v42, 0.1 }
  0x2b   :  { %583 = vmatpush.xpose.msra.mxu0 %v109_v43 }
  0x2f   :  { %584 = vmatpush.xpose.msra.mxu0 %v108_v44 }
  0x33   :  { %585 = vmatpush.xpose.msra.mxu0 %v107_v45  ;;  %v98_v45 = vld [vmem:[#allocation4 + $0x8] sm:$0xff] }
  0x37   :  { %586 = vmatpush.xpose.msra.mxu0 %v106_v46 }
  0x3b   :  { %587 = vmatpush.xpose.msra.mxu0 %v105_v47  ;;  %v1186_v47 = vld [vmem:[%s1351_s3 + $0xc] sm:$0xf] }
  0x91   :  { %v165_v48 = vpop.f32.mrf.mxu1 }
  0x92   :  { %v310_v49 = vsel %vm306_vm1, %v165_v48, -inf }
  0x93   :  { %311 = vmax.xlane.f32.xlu2 %v310_v49 }
  0x96   :  { %v142_v50 = vpop.f32.mrf.mxu3 }
  0x97   :  { %v307_v62 = vsel %vm306_vm1, %v142_v50, -inf }
  0x98   :  { %v188_v51 = vpop.f32.mrf.mxu2 }
  0x99   :  { %v313_v52 = vsel %vm306_vm1, %v188_v51, -inf }
  0x9b   :  { %314 = vmax.xlane.f32.xlu2 %v313_v52 }
  0x9c   :  { %v234_v53 = vpop.f32.mrf.mxu1 }
  0x9d   :  { %v319_v63 = vsel %vm306_vm1, %v234_v53, -inf }
  0x9f   :  { %v211_v54 = vpop.f32.mrf.mxu3 }
  0xa0   :  { %v280_v55 = vpop.f32.mrf.mxu2  ;;  %v316_v57 = vsel %vm306_vm1, %v211_v54, -inf }
  0xa1   :  { %v325_v56 = vsel %vm306_vm1, %v280_v55, -inf  ;;  %317 = vmax.xlane.f32.xlu0 %v316_v57 }
  0xa2   :  { %326 = vmax.xlane.f32.xlu1 %v325_v56 }
  0xa4   :  { %v257_v58 = vpop.f32.mrf.mxu1 }
  0xa5   :  { %v322_v59 = vsel %vm306_vm1, %v257_v58, -inf }
  0xa7   :  { %v303_v60 = vpop.f32.mrf.mxu3 }
  0xa8   :  { %v328_v61 = vsel %vm306_vm1, %v303_v60, -inf }
  0xa9   :  { %329 = vmax.xlane.f32.xlu0 %v328_v61 }
  0xaa   :  { %323 = vmax.xlane.f32.xlu1 %v322_v59 }
  0xb1   :  { %320 = vmax.xlane.f32.xlu0 %v319_v63 }
  0xb2   :  { %308 = vmax.xlane.f32.xlu1 %v307_v62 }
 0x106   :  { %v312_v0 = vpop.xlane.xlu2 %311 }
 0x107   :  { %v332_v1 = vsub.f32 %v165_v48, %v312_v0  ;;  %v101_v0 = vld [vmem:[#allocation4 + $0x20] sm:$0xff] }
 0x109   :  { %v341_v2 = vmul.f32 1.442695, %v332_v1 }
 0x10b   :  { %910 = vpow2.f32 %v341_v2 }
 0x10e   :  { %v315_v12 = vpop.xlane.xlu2 %314 }
 0x10f   :  { %v333_v18 = vsub.f32 %v188_v51, %v315_v12  ;;  %v104_v51 = vld [vmem:[#allocation4 + $0x38] sm:$0xff] }
 0x110   :  { %588 = vmatpush.xpose.msra.mxu0 %v104_v51  ;;  %v100_v12 = vld [vmem:[#allocation4 + $0x18] sm:$0xff] }
 0x111   :  { %v1087_v3 = vpop.eup %910  ;;  %v343_v24 = vmul.f32 1.442695, %v333_v18 }
 0x112   :  { %v358_v4 = vsel %vm306_vm1, %v1087_v3, 0.0 }
 0x113   :  { %359 = vadd.xlane.f32.xlu0 %v358_v4 }
 0x114   :  { %v318_v7 = vpop.xlane.xlu0 %317 }
 0x115   :  { %v327_v6 = vpop.xlane.xlu1 %326  ;;  %v334_v9 = vsub.f32 %v211_v54, %v318_v7  ;;  %v103_v54 = vld [vmem:[#allocation4 + $0x30] sm:$0xff] }
 0x116   :  { %v337_v8 = vsub.f32 %v280_v55, %v327_v6  ;;  %589 = vmatpush.xpose.msra.mxu0 %v103_v54 }
 0x117   :  { %v345_v11 = vmul.f32 1.442695, %v334_v9  ;;  %v114_v9 = vld [vmem:[%s1351_s3 + $0x4] sm:$0xf] }
 0x118   :  { %v351_v10 = vmul.f32 1.442695, %v337_v8  ;;  %vm500_vm7 = vcmp.ge.f32.partialorder %v114_v9, 0.1 }
 0x11a   :  { %912 = vpow2.f32 %v351_v10 }
 0x11b   :  { %914 = vpow2.f32 %v345_v11 }
 0x11c   :  { %v330_v14 = vpop.xlane.xlu0 %329 }
 0x11d   :  { %v324_v13 = vpop.xlane.xlu1 %323  ;;  %v338_v16 = vsub.f32 %v303_v60, %v330_v14  ;;  %v102_v60 = vld [vmem:[#allocation4 + $0x28] sm:$0xff] }
 0x11e   :  { %v336_v15 = vsub.f32 %v257_v58, %v324_v13  ;;  %590 = vmatpush.xpose.msra.mxu0 %v102_v60 }
 0x11f   :  { %v353_v20 = vmul.f32 1.442695, %v338_v16 }
 0x120   :  { %v1091_v17 = vpop.eup %912  ;;  %v349_v19 = vmul.f32 1.442695, %v336_v15 }
 0x121   :  { %v1093_v21 = vpop.eup %914  ;;  %v373_v22 = vsel %vm306_vm1, %v1091_v17, 0.0 }
 0x122   :  { %916 = vpow2.f32 %v349_v19  ;;  %374 = vadd.xlane.f32.xlu2 %v373_v22  ;;  %v364_v23 = vsel %vm306_vm1, %v1093_v21, 0.0  ;;  %591 = vmatpush.xpose.msra.mxu0 %v101_v0  ;;  %v1014_v22 = vmov 1983009808  }
 0x123   :  { %918 = vpow2.f32 %v353_v20  ;;  %365 = vadd.xlane.f32.xlu0 %v364_v23  ;;  %v99_v20 = vld [vmem:[#allocation4 + $0x10] sm:$0xff]  ;;  %v527_v23 = vunpack.c.l.s4 %v1014_v22 }
 0x124   :  { %v321_v26 = vpop.xlane.xlu0 %320  ;;  %920 = vpow2.f32 %v343_v24 }
 0x125   :  { %v309_v25 = vpop.xlane.xlu1 %308  ;;  %v335_v28 = vsub.f32 %v234_v53, %v321_v26  ;;  %v1181_v46 = vunpack.c.0.s8 %v527_v23 }
 0x126   :  { %v331_v27 = vsub.f32 %v142_v50, %v309_v25  ;;  %592 = vmatpush.xpose.msra.mxu0 %v100_v12 }
 0x127   :  { %v347_v31 = vmul.f32 1.442695, %v335_v28 }
 0x128   :  { %v1099_v29 = vpop.eup %916  ;;  %v339_v30 = vmul.f32 1.442695, %v331_v27 }
 0x129   :  { %v1101_v32 = vpop.eup %918  ;;  %v370_v33 = vsel %vm306_vm1, %v1099_v29, 0.0 }
 0x12a   :  { %922 = vpow2.f32 %v339_v30  ;;  %371 = vadd.xlane.f32.xlu1 %v370_v33  ;;  %v376_v34 = vsel %vm306_vm1, %v1101_v32, 0.0  ;;  %v1107_v35 = vpop.eup %920  ;;  %593 = vmatpush.xpose.msra.mxu0 %v99_v20 }
 0x12b   :  { %924 = vpow2.f32 %v347_v31  ;;  %377 = vadd.xlane.f32.xlu2 %v376_v34  ;;  %v361_v38 = vsel %vm306_vm1, %v1107_v35, 0.0 }
 0x12e   :  { %594 = vmatpush.xpose.msra.mxu0 %v98_v45 }
 0x130   :  { %v1109_v36 = vpop.eup %922 }
 0x131   :  { %v1111_v37 = vpop.eup %924  ;;  %v355_v39 = vsel %vm306_vm1, %v1109_v36, 0.0 }
 0x132   :  { %362 = vadd.xlane.f32.xlu1 %v361_v38  ;;  %356 = vadd.xlane.f32.xlu0 %v355_v39  ;;  %v367_v40 = vsel %vm306_vm1, %v1111_v37, 0.0  ;;  %vm502_vm1 = vcmp.ge.f32.partialorder %v1186_v47, 0.1 }
 0x133   :  { %368 = vadd.xlane.f32.xlu2 %v367_v40 }
 0x186   :  { %v360_v48 = vpop.xlane.xlu0 %359 }
 0x187   :  { %926 = vrcp.f32 %v360_v48  ;;  %v405_v58 = vand.u32 2147483648, %v360_v48  ;;  %vm399_vm3 = vweird.f32 %v360_v48  ;;  %v403_v59 = vand.u32 2147483647, %v360_v48 }
 0x189   :  { %v406_v62 = vor.u32 1.1754944e-38, %v405_v58  ;;  %vm404_vm5 = vcmp.eq.f32.partialorder %v403_v59, 8.507059e+37 }
 0x18d   :  { %v927_v49 = vpop.eup %926 }
 0x18e   :  { %v395_v50 = vmul.f32 %v927_v49, %v360_v48  ;;  %vm400_vm2 = vweird.f32 %v927_v49 }
 0x18f   :  { %vm401_vm4 = vmor %vm399_vm3, %vm400_vm2 }
 0x190   :  { %v396_v52 = vsub.f32 1.0, %v395_v50 }
 0x192   :  { %v397_v53 = vmul.f32 %v927_v49, %v396_v52 }
 0x194   :  { %v398_v56 = vadd.f32 %v927_v49, %v397_v53 }
 0x195   :  { %v375_v55 = vpop.xlane.xlu2 %374 }
 0x196   :  { %928 = vrcp.f32 %v375_v55  ;;  %v366_v57 = vpop.xlane.xlu0 %365  ;;  %v402_v61 = vsel %vm401_vm4, %v927_v49, %v398_v56  ;;  %v478_v14 = vand.u32 2147483647, %v375_v55  ;;  %v480_v15 = vand.u32 2147483648, %v375_v55  ;;  %v1203_v56 = vld [vmem:[%s1351_s3 + $0x14] sm:$0xf] }
 0x197   :  { %930 = vrcp.f32 %v366_v57  ;;  %v407_v2 = vsel %vm404_vm5, %v406_v62, %v402_v61  ;;  %v433_v16 = vand.u32 2147483647, %v366_v57  ;;  %v435_v19 = vand.u32 2147483648, %v366_v57  ;;  %v97_v62 = vld [vmem:[#allocation4] sm:$0xff] }
 0x198   :  { %v408_v10 = vmul.f32 %v1087_v3, %v407_v2  ;;  %vm474_vm9 = vweird.f32 %v375_v55  ;;  %vm429_vm10 = vweird.f32 %v366_v57  ;;  %vm1151_vm12 = vcmp.eq.f32.partialorder %v478_v14, 8.507059e+37  ;;  %595 = vmatpush.xpose.msra.mxu0 %v97_v62 }
 0x199   :  { %v481_v31 = vor.u32 1.1754944e-38, %v480_v15  ;;  %vm1155_vm13 = vcmp.eq.f32.partialorder %v433_v16, 8.507059e+37  ;;  %v436_v41 = vor.u32 1.1754944e-38, %v435_v19 }
 0x19a   :  { %v508_v25 = vmul.f32 1.1111112, %v408_v10 }
 0x19c   :  { %v1119_v63 = vpop.eup %928  ;;  %v1194_v51 = vsel %vm500_vm7, %v508_v25, 0.0 }
 0x19d   :  { %v1121_v1 = vpop.eup %930  ;;  %v470_v4 = vmul.f32 %v1119_v63, %v375_v55  ;;  %v1124_v5 = vpop.xlane.xlu1 %371  ;;  %vm475_vm6 = vweird.f32 %v1119_v63 }
 0x19e   :  { %v425_v6 = vmul.f32 %v1121_v1, %v366_v57  ;;  %932 = vrcp.f32 %v1124_v5  ;;  %v1128_v7 = vpop.xlane.xlu2 %377  ;;  %vm430_vm8 = vweird.f32 %v1121_v1  ;;  %vm1147_vm11 = vmor %vm474_vm9, %vm475_vm6  ;;  %v463_v50 = vand.u32 2147483647, %v1124_v5 }
 0x19f   :  { %v471_v8 = vsub.f32 1.0, %v470_v4  ;;  %934 = vrcp.f32 %v1128_v7  ;;  %vm1168_vm14 = vmor %vm429_vm10, %vm430_vm8  ;;  %v465_v52 = vand.u32 2147483648, %v1124_v5  ;;  %v495_v54 = vand.u32 2147483648, %v1128_v7 }
 0x1a0   :  { %v426_v11 = vsub.f32 1.0, %v425_v6  ;;  %v493_v60 = vand.u32 2147483647, %v1128_v7  ;;  %vm459_vm3 = vweird.f32 %v1124_v5  ;;  %vm1224_vm4 = vcmp.eq.f32.partialorder %v463_v50, 8.507059e+37 }
 0x1a1   :  { %v472_v13 = vmul.f32 %v1119_v63, %v471_v8  ;;  %vm489_vm5 = vweird.f32 %v1128_v7  ;;  %vm504_vm6 = vcmp.ge.f32.partialorder %v1203_v56, 0.1  ;;  %v466_v4 = vor.u32 1.1754944e-38, %v465_v52 }
 0x1a2   :  { %v427_v18 = vmul.f32 %v1121_v1, %v426_v11  ;;  %v496_v8 = vor.u32 1.1754944e-38, %v495_v54  ;;  %vm494_vm10 = vcmp.eq.f32.partialorder %v493_v60, 8.507059e+37  ;;  %v117_v54 = vld [vmem:[%s1351_s3 + $0x10] sm:$0xf] }
 0x1a3   :  { %v473_v24 = vadd.f32 %v1119_v63, %v472_v13 }
 0x1a4   :  { %v1140_v3 = vpop.eup %932  ;;  %v428_v26 = vadd.f32 %v1121_v1, %v427_v18 }
 0x1a5   :  { %v1143_v27 = vpop.eup %934  ;;  %v455_v34 = vmul.f32 %v1140_v3, %v1124_v5  ;;  %v1161_v38 = vpop.xlane.xlu1 %362  ;;  %v477_v39 = vsel %vm1147_vm11, %v1119_v63, %v473_v24  ;;  %vm460_vm15 = vweird.f32 %v1140_v3  ;;  %v1220_v63 = vld [vmem:[%s1351_s3 + $0x18] sm:$0xf] }
 0x1a6   :  { %v485_v43 = vmul.f32 %v1143_v27, %v1128_v7  ;;  %v1179_v44 = vpop.xlane.xlu2 %368  ;;  %v432_v48 = vsel %vm1168_vm14, %v1121_v1, %v428_v26  ;;  %936 = vrcp.f32 %v1161_v38  ;;  %v482_v55 = vsel %vm1151_vm12, %v481_v31, %v477_v39  ;;  %v1215_v61 = vpop.xlane.xlu0 %356  ;;  %vm461_vm7 = vmor %vm459_vm3, %vm460_vm15 }
 0x1a7   :  { %v456_v49 = vsub.f32 1.0, %v455_v34  ;;  %938 = vrcp.f32 %v1179_v44  ;;  %v437_v58 = vsel %vm1155_vm13, %v436_v41, %v432_v48  ;;  %vm490_vm2 = vweird.f32 %v1143_v27 }
 0x1a8   :  { %v486_v53 = vsub.f32 1.0, %v485_v43  ;;  %v483_v2 = vmul.f32 %v1091_v17, %v482_v55  ;;  %v438_v5 = vmul.f32 %v1093_v21, %v437_v58  ;;  %vm491_vm8 = vmor %vm489_vm5, %vm490_vm2  ;;  %v418_v7 = vand.u32 2147483647, %v1161_v38  ;;  %v1247_v21 = vld [vmem:[%s1351_s3 + $0x8] sm:$0xf] }
 0x1a9   :  { %v457_v57 = vmul.f32 %v1140_v3, %v456_v49  ;;  %940 = vrcp.f32 %v1215_v61  ;;  %vm505_vm9 = vcmp.ge.f32.partialorder %v1220_v63, 0.1  ;;  %vm414_vm11 = vweird.f32 %v1161_v38 }
 0x1aa   :  { %v487_v59 = vmul.f32 %v1143_v27, %v486_v53  ;;  %v420_v16 = vand.u32 2147483648, %v1161_v38  ;;  %v513_v18 = vmul.f32 1.1111112, %v483_v2  ;;  %vm524_vm12 = vcmask 1047556  }
 0x1ab   :  { %v458_v0 = vadd.f32 %v1140_v3, %v457_v57  ;;  %v510_v23 = vmul.f32 1.1111112, %v438_v5  ;;  %vm501_vm13 = vcmp.ge.f32.partialorder %v1247_v21, 0.1  ;;  %vm1256_vm14 = vcmp.eq.f32.partialorder %v418_v7, 8.507059e+37 }
 0x1ac   :  { %v488_v6 = vadd.f32 %v1143_v27, %v487_v59  ;;  %v937_v9 = vpop.eup %936  ;;  %v421_v30 = vor.u32 1.1754944e-38, %v420_v16  ;;  %vm444_vm2 = vweird.f32 %v1179_v44  ;;  %v388_v50 = vand.u32 2147483647, %v1215_v61 }
 0x1ad   :  { %v462_v10 = vsel %vm461_vm7, %v1140_v3, %v458_v0  ;;  %v410_v12 = vmul.f32 %v937_v9, %v1161_v38  ;;  %v939_v13 = vpop.eup %938  ;;  %v450_v3 = vand.u32 2147483648, %v1179_v44  ;;  %vm415_vm15 = vweird.f32 %v937_v9 }
 0x1ae   :  { %v467_v17 = vsel %vm1224_vm4, %v466_v4, %v462_v10  ;;  %v492_v11 = vsel %vm491_vm8, %v1143_v27, %v488_v6  ;;  %v440_v22 = vmul.f32 %v939_v13, %v1179_v44  ;;  %vm445_vm3 = vweird.f32 %v939_v13  ;;  %vm416_vm4 = vmor %vm414_vm11, %vm415_vm15 }
 0x1af   :  { %v468_v14 = vmul.f32 %v1099_v29, %v467_v17  ;;  %v497_v15 = vsel %vm494_vm10, %v496_v8, %v492_v11  ;;  %v411_v20 = vsub.f32 1.0, %v410_v12  ;;  %v448_v29 = vand.u32 2147483647, %v1179_v44  ;;  %v113_v8 = vld [vmem:[%s1351_s3] sm:$0xf] }
 0x1b0   :  { %v498_v19 = vmul.f32 %v1101_v32, %v497_v15  ;;  %v441_v27 = vsub.f32 1.0, %v440_v22  ;;  %v941_v32 = vpop.eup %940  ;;  %v518_v40 = vsel %vm502_vm1, %v510_v23, 0.0  ;;  %v451_v45 = vor.u32 1.1754944e-38, %v450_v3 }
 0x1b1   :  { %v412_v26 = vmul.f32 %v937_v9, %v411_v20  ;;  %v512_v28 = vmul.f32 1.1111112, %v468_v14  ;;  %v380_v39 = vmul.f32 %v941_v32, %v1215_v61  ;;  %vm1270_vm5 = vcmp.eq.f32.partialorder %v448_v29, 8.507059e+37 }
 0x1b2   :  { %v514_v25 = vmul.f32 1.1111112, %v498_v19  ;;  %v442_v34 = vmul.f32 %v939_v13, %v441_v27  ;;  %v390_v38 = vand.u32 2147483648, %v1215_v61  ;;  %vm385_vm1 = vweird.f32 %v941_v32 }
 0x1b3   :  { %v413_v33 = vadd.f32 %v937_v9, %v412_v26  ;;  %v381_v42 = vsub.f32 1.0, %v380_v39  ;;  %v520_v52 = vsel %vm504_vm6, %v512_v28, 0.0  ;;  %v521_v56 = vsel %vm505_vm9, %v513_v18, 0.0 }
 0x1b4   :  { %v522_v31 = vsel %vm506_vm0, %v514_v25, 0.0  ;;  %v443_v49 = vadd.f32 %v939_v13, %v442_v34  ;;  %vm446_vm0 = vmor %vm444_vm2, %vm445_vm3  ;;  %v530_v58 = vrot.slane %v518_v40, 4  ;;  %vm384_vm6 = vweird.f32 %v1215_v61 }
 0x1b5   :  { %v542_v41 = vrot.slane %v522_v31, 4  ;;  %v417_v48 = vsel %vm416_vm4, %v937_v9, %v413_v33  ;;  %v382_v57 = vmul.f32 %v941_v32, %v381_v42  ;;  %vm503_vm7 = vcmp.ge.f32.partialorder %v117_v54, 0.1  ;;  %vm386_vm8 = vmor %vm384_vm6, %vm385_vm1 }
 0x1b6   :  { %v422_v47 = vsel %vm1256_vm14, %v421_v30, %v417_v48  ;;  %v447_v55 = vsel %vm446_vm0, %v939_v13, %v443_v49  ;;  %vm389_vm10 = vcmp.eq.f32.partialorder %v388_v50, 8.507059e+37  ;;  %v391_v0 = vor.u32 1.1754944e-38, %v390_v38 }
 0x1b7   :  { %v423_v53 = vmul.f32 %v1107_v35, %v422_v47  ;;  %v452_v59 = vsel %vm1270_vm5, %v451_v45, %v447_v55  ;;  %v543_v44 = vsel %vm524_vm12, %v542_v41, %v520_v52  ;;  %v383_v35 = vadd.f32 %v941_v32, %v382_v57 }
 0x1b8   :  { %v453_v62 = vmul.f32 %v1111_v37, %v452_v59  ;;  %v1015_v1 = vmov 1934713408   ;;  %v547_v37 = vperm.slane %v543_v44, %v1181_v46  ;;  %v536_v9 = vrot.slane %v521_v56, 4 }
 0x1b9   :  { %v509_v60 = vmul.f32 1.1111112, %v423_v53  ;;  %v553_v2 = vunpack.c.l.s4 %v1015_v1  ;;  %v387_v6 = vsel %vm386_vm8, %v941_v32, %v383_v35  ;;  %v531_v61 = vsel %vm524_vm12, %v530_v58, %v1194_v51 }
 0x1ba   :  { %v511_v4 = vmul.f32 1.1111112, %v453_v62  ;;  %v392_v5 = vsel %vm389_vm10, %v391_v0, %v387_v6  ;;  %vm499_vm9 = vcmp.ge.f32.partialorder %v113_v8, 0.1  ;;  %v535_v13 = vperm.slane %v531_v61, %v1181_v46 }
 0x1bb   :  { %v517_v63 = vsel %vm501_vm13, %v509_v60, 0.0  ;;  %v393_v7 = vmul.f32 %v1109_v36, %v392_v5  ;;  %v554_v21 = vunpack.c.0.s8 %v553_v2  ;;  %v560_v15 = vrot.slane %v547_v37, 4 }
 0x1bc   :  { %v519_v10 = vsel %vm503_vm7, %v511_v4, 0.0  ;;  %v523_v17 = vrot.slane %v517_v63, 4  ;;  %v548_v36 = vrot.slane %v535_v13, 4  ;;  %vm693_vm11 = vcmask 64512  }
 0x1bd   :  { %v537_v11 = vsel %vm524_vm12, %v536_v9, %v519_v10  ;;  %v507_v12 = vmul.f32 1.1111112, %v393_v7 }
 0x1be   :  { %v541_v14 = vperm.slane %v537_v11, %v1181_v46 }
 0x1bf   :  { %v515_v16 = vsel %vm499_vm9, %v507_v12, 0.0 }
 0x1c0   :  { %v561_v18 = vsel %vm524_vm12, %v560_v15, %v541_v14  ;;  %v525_v19 = vsel %vm524_vm12, %v523_v17, %v515_v16  ;;  %v562_v3 = vrot.slane %v541_v14, 4 }
 0x1c1   :  { %v567_v51 = vperm.slane %v561_v18, %v554_v21  ;;  %v529_v20 = vperm.slane %v525_v19, %v1181_v46 }
 0x1c2   :  { %v563_v27 = vsel %vm524_vm12, %v547_v37, %v562_v3 }
 0x1c3   :  { %v572_v22 = vrot.slane %v567_v51, 4  ;;  %v549_v23 = vsel %vm524_vm12, %v548_v36, %v529_v20  ;;  %v550_v26 = vrot.slane %v529_v20, 4  ;;  %v571_v28 = vperm.slane %v563_v27, %v554_v21 }
 0x1c4   :  { %v555_v24 = vperm.slane %v549_v23, %v554_v21 }
 0x1c5   :  { %v551_v30 = vsel %vm524_vm12, %v535_v13, %v550_v26  ;;  %v576_v31 = vrot.slane %v571_v28, 4 }
 0x1c6   :  { %v573_v29 = vsel %vm524_vm12, %v572_v22, %v555_v24  ;;  %v574_v25 = vrot.slane %v555_v24, 4  ;;  %v559_v46 = vperm.slane %v551_v30, %v554_v21 }
 0x1c7   :  { %596 = vmatmul.f32.vlgmr.msra.gmra.mxu0 %v573_v29 }
 0x1c8   :  { %v575_v32 = vsel %vm524_vm12, %v567_v51, %v574_v25  ;;  %v577_v33 = vsel %vm524_vm12, %v576_v31, %v559_v46  ;;  %v578_v34 = vrot.slane %v559_v46, 4 }
 0x1ca   :  { %v579_v39 = vsel %vm524_vm12, %v571_v28, %v578_v34 }
 0x1cf   :  { %599 = vmatmul.f32.gmra.mxu0 %v575_v32 }
 0x1d7   :  { %602 = vmatmul.f32.gmra.mxu0 %v577_v33 }
 0x1df   :  { %605 = vmatmul.f32.gmra.mxu0 %v579_v39 }
 0x244   :  { %v597_v40 = vpop.f32.mrf.mxu0 }
 0x245   :  { %624 = vmatpush.xpose.msrb.mxu1 %v597_v40 }
 0x248   :  { %625 = vmatmul.f32.vlgmr.msrb.gmra.mxu1 %v597_v40 }
 0x24c   :  { %v600_v41 = vpop.f32.mrf.mxu0 }
 0x24d   :  { %644 = vmatpush.xpose.msra.mxu2 %v600_v41 }
 0x250   :  { %645 = vmatmul.f32.vlgmr.msra.gmra.mxu2 %v600_v41 }
 0x251   :  { %808 = vmatpush.msrb.mxu2 %v573_v29 }
 0x253   :  { %877 = vmatpush.msra.mxu2 %v579_v39 }
 0x254   :  { %v603_v43 = vpop.f32.mrf.mxu0 }
 0x255   :  { %664 = vmatpush.xpose.msrb.mxu3 %v603_v43 }
 0x258   :  { %665 = vmatmul.f32.vlgmr.msrb.gmra.mxu3 %v603_v43 }
 0x259   :  { %831 = vmatpush.msra.mxu3 %v575_v32 }
 0x25c   :  { %v606_v45 = vpop.f32.mrf.mxu0 }
 0x25d   :  { %684 = vmatpush.xpose.msra.mxu1 %v606_v45 }
 0x260   :  { %685 = vmatmul.f32.vlgmr.msra.gmra.mxu1 %v606_v45 }
 0x261   :  { %854 = vmatpush.msrb.mxu1 %v577_v33 }
 0x2c5   :  { %v626_v48 = vpop.f32.mrf.mxu1 }
 0x2c6   :  { %v689_v49 = vmul.f32 0.088388346, %v626_v48 }
 0x2c8   :  { %v694_v42 = vsel %vm693_vm11, %v689_v49, -inf }
 0x2c9   :  { %695 = vmax.xlane.f32.xlu1 %v694_v42 }
 0x2d3   :  { %v646_v50 = vpop.f32.mrf.mxu2 }
 0x2d4   :  { %v690_v52 = vmul.f32 0.088388346, %v646_v50 }
 0x2d6   :  { %v697_v47 = vsel %vm693_vm11, %v690_v52, -inf }
 0x2d7   :  { %698 = vmax.xlane.f32.xlu2 %v697_v47 }
 0x2db   :  { %v666_v38 = vpop.f32.mrf.mxu3 }
 0x2dc   :  { %v691_v53 = vmul.f32 0.088388346, %v666_v38 }
 0x2dd   :  { %v686_v54 = vpop.f32.mrf.mxu1 }
 0x2de   :  { %v692_v55 = vmul.f32 0.088388346, %v686_v54  ;;  %v700_v57 = vsel %vm693_vm11, %v691_v53, -inf }
 0x2df   :  { %701 = vmax.xlane.f32.xlu1 %v700_v57 }
 0x2e0   :  { %v703_v56 = vsel %vm693_vm11, %v692_v55, -inf }
 0x2e1   :  { %704 = vmax.xlane.f32.xlu0 %v703_v56 }
 0x33c   :  { %v696_v58 = vpop.xlane.xlu1 %695 }
 0x33d   :  { %v706_v59 = vsub.f32 %v689_v49, %v696_v58 }
 0x33f   :  { %v710_v44 = vmul.f32 1.442695, %v706_v59 }
 0x341   :  { %942 = vpow2.f32 %v710_v44 }
 0x347   :  { %v943_v60 = vpop.eup %942 }
 0x348   :  { %v718_v62 = vsel %vm693_vm11, %v943_v60, 0.0 }
 0x349   :  { %719 = vadd.xlane.f32.xlu2 %v718_v62 }
 0x34a   :  { %v699_v35 = vpop.xlane.xlu2 %698 }
 0x34b   :  { %v707_v0 = vsub.f32 %v690_v52, %v699_v35 }
 0x34d   :  { %v712_v1 = vmul.f32 1.442695, %v707_v0 }
 0x34f   :  { %944 = vpow2.f32 %v712_v1 }
 0x352   :  { %v702_v2 = vpop.xlane.xlu1 %701 }
 0x353   :  { %v708_v63 = vsub.f32 %v691_v53, %v702_v2 }
 0x354   :  { %v705_v4 = vpop.xlane.xlu0 %704 }
 0x355   :  { %v945_v6 = vpop.eup %944  ;;  %v714_v8 = vmul.f32 1.442695, %v708_v63  ;;  %v709_v37 = vsub.f32 %v692_v55, %v705_v4 }
 0x356   :  { %v721_v9 = vsel %vm693_vm11, %v945_v6, 0.0 }
 0x357   :  { %946 = vpow2.f32 %v714_v8  ;;  %v716_v5 = vmul.f32 1.442695, %v709_v37  ;;  %722 = vadd.xlane.f32.xlu0 %v721_v9 }
 0x359   :  { %948 = vpow2.f32 %v716_v5 }
 0x35d   :  { %v1322_v61 = vpop.eup %946 }
 0x35e   :  { %v724_v10 = vsel %vm693_vm11, %v1322_v61, 0.0 }
 0x35f   :  { %v1326_v7 = vpop.eup %948  ;;  %725 = vadd.xlane.f32.xlu2 %v724_v10 }
 0x360   :  { %v727_v17 = vsel %vm693_vm11, %v1326_v7, 0.0 }
 0x361   :  { %728 = vadd.xlane.f32.xlu1 %v727_v17 }
 0x3bc   :  { %v720_v11 = vpop.xlane.xlu2 %719 }
 0x3bd   :  { %950 = vrcp.f32 %v720_v11  ;;  %v741_v14 = vand.u32 2147483648, %v720_v11  ;;  %v739_v16 = vand.u32 2147483647, %v720_v11  ;;  %vm735_vm13 = vweird.f32 %v720_v11 }
 0x3bf   :  { %v742_v51 = vor.u32 1.1754944e-38, %v741_v14  ;;  %vm740_vm15 = vcmp.eq.f32.partialorder %v739_v16, 8.507059e+37 }
 0x3c3   :  { %v951_v21 = vpop.eup %950 }
 0x3c4   :  { %v731_v12 = vmul.f32 %v951_v21, %v720_v11  ;;  %vm736_vm12 = vweird.f32 %v951_v21 }
 0x3c5   :  { %vm737_vm14 = vmor %vm735_vm13, %vm736_vm12 }
 0x3c6   :  { %v732_v13 = vsub.f32 1.0, %v731_v12 }
 0x3c8   :  { %v733_v15 = vmul.f32 %v951_v21, %v732_v13 }
 0x3ca   :  { %v734_v18 = vadd.f32 %v951_v21, %v733_v15  ;;  %v723_v19 = vpop.xlane.xlu0 %722 }
 0x3cb   :  { %952 = vrcp.f32 %v723_v19  ;;  %v756_v26 = vand.u32 2147483648, %v723_v19  ;;  %v754_v32 = vand.u32 2147483647, %v723_v19  ;;  %vm750_vm3 = vweird.f32 %v723_v19 }
 0x3cc   :  { %v738_v20 = vsel %vm737_vm14, %v951_v21, %v734_v18 }
 0x3cd   :  { %v743_v36 = vsel %vm740_vm15, %v742_v51, %v738_v20  ;;  %v757_v46 = vor.u32 1.1754944e-38, %v756_v26  ;;  %vm755_vm5 = vcmp.eq.f32.partialorder %v754_v32, 8.507059e+37 }
 0x3ce   :  { %v744_v22 = vmul.f32 %v943_v60, %v743_v36 }
 0x3d0   :  { %900 = vmatmul.msk.f32.vlgmr.msrb.gmra.mxu2 %vm693_vm11, %v744_v22 }
 0x3d1   :  { %v953_v23 = vpop.eup %952 }
 0x3d2   :  { %v746_v24 = vmul.f32 %v953_v23, %v723_v19  ;;  %v726_v29 = vpop.xlane.xlu2 %725  ;;  %vm751_vm2 = vweird.f32 %v953_v23 }
 0x3d3   :  { %954 = vrcp.f32 %v726_v29  ;;  %vm752_vm4 = vmor %vm750_vm3, %vm751_vm2  ;;  %v771_v45 = vand.u32 2147483648, %v726_v29  ;;  %v769_v49 = vand.u32 2147483647, %v726_v29  ;;  %vm765_vm1 = vweird.f32 %v726_v29 }
 0x3d4   :  { %v747_v3 = vsub.f32 1.0, %v746_v24  ;;  %v729_v25 = vpop.xlane.xlu1 %728 }
 0x3d5   :  { %956 = vrcp.f32 %v729_v25  ;;  %v786_v50 = vand.u32 2147483648, %v729_v25  ;;  %v784_v38 = vand.u32 2147483647, %v729_v25  ;;  %v772_v53 = vor.u32 1.1754944e-38, %v771_v45 }
 0x3d6   :  { %v748_v27 = vmul.f32 %v953_v23, %v747_v3  ;;  %vm770_vm8 = vcmp.eq.f32.partialorder %v769_v49, 8.507059e+37  ;;  %vm780_vm10 = vweird.f32 %v729_v25 }
 0x3d7   :  { %v787_v56 = vor.u32 1.1754944e-38, %v786_v50  ;;  %vm785_vm12 = vcmp.eq.f32.partialorder %v784_v38, 8.507059e+37 }
 0x3d8   :  { %v749_v28 = vadd.f32 %v953_v23, %v748_v27 }
 0x3d9   :  { %v955_v30 = vpop.eup %954 }
 0x3da   :  { %v753_v31 = vsel %vm752_vm4, %v953_v23, %v749_v28  ;;  %v761_v33 = vmul.f32 %v955_v30, %v726_v29  ;;  %vm766_vm0 = vweird.f32 %v955_v30 }
 0x3db   :  { %v957_v34 = vpop.eup %956  ;;  %v758_v39 = vsel %vm755_vm5, %v757_v46, %v753_v31  ;;  %vm767_vm7 = vmor %vm765_vm1, %vm766_vm0 }
 0x3dc   :  { %v759_v40 = vmul.f32 %v945_v6, %v758_v39  ;;  %v762_v41 = vsub.f32 1.0, %v761_v33  ;;  %v776_v43 = vmul.f32 %v957_v34, %v729_v25  ;;  %vm781_vm6 = vweird.f32 %v957_v34 }
 0x3dd   :  { %vm782_vm9 = vmor %vm780_vm10, %vm781_vm6 }
 0x3de   :  { %v763_v48 = vmul.f32 %v955_v30, %v762_v41  ;;  %v777_v42 = vsub.f32 1.0, %v776_v43  ;;  %901 = vmatmul.msk.f32.vlgmr.msra.gmra.mxu3 %vm693_vm11, %v759_v40 }
 0x3e0   :  { %v764_v52 = vadd.f32 %v955_v30, %v763_v48  ;;  %v778_v47 = vmul.f32 %v957_v34, %v777_v42 }
 0x3e2   :  { %v768_v54 = vsel %vm767_vm7, %v955_v30, %v764_v52  ;;  %v779_v55 = vadd.f32 %v957_v34, %v778_v47 }
 0x3e3   :  { %v773_v57 = vsel %vm770_vm8, %v772_v53, %v768_v54 }
 0x3e4   :  { %v774_v58 = vmul.f32 %v1322_v61, %v773_v57  ;;  %v783_v59 = vsel %vm782_vm9, %v957_v34, %v779_v55 }
 0x3e5   :  { %v788_v44 = vsel %vm785_vm12, %v787_v56, %v783_v59 }
 0x3e6   :  { %v789_v60 = vmul.f32 %v1326_v7, %v788_v44  ;;  %902 = vmatmul.msk.f32.vlgmr.msrb.gmra.mxu1 %vm693_vm11, %v774_v58 }
 0x3e8   :  { %903 = vmatmul.msk.f32.vlgmr.msra.gmra.mxu2 %vm693_vm11, %v789_v60 }
 0x453   :  { %v810_v62 = vpop.f32.mrf.mxu2 }
 0x454   :  { %882 = vst [vmem:[%s1352_s4] sm:$0xff] %v810_v62 }
 0x461   :  { %v833_v35 = vpop.f32.mrf.mxu3 }
 0x462   :  { %883 = vst [vmem:[%s1352_s4 + $0x8] sm:$0xff] %v833_v35 }
 0x463   :  { %v856_v0 = vpop.f32.mrf.mxu1 }
 0x464   :  { %884 = vst [vmem:[%s1352_s4 + $0x10] sm:$0xff] %v856_v0 }
 0x46b   :  { %v879_v1 = vpop.f32.mrf.mxu2 }
 0x46c   :  { %885 = vst [vmem:[%s1352_s4 + $0x18] sm:$0xff] %v879_v1 }
 0x46d   :  { %890 = vsyncpa [#allocation3], 1 }
 0x46e   :  { %891 = vsyncpa [#allocation5], 1 }

</bundles_post_ra>
